<compile_context>
chip_gen: v7x
topology: tpu7x:2x2x1
jax: 0.10.0
libtpu: 0.0.40
codegen_flags: <defaults>
</compile_context>

<pallas_src>
import functools

import jax
import jax.numpy as jnp
from jax.experimental import pallas as pl
from jax.experimental.pallas import tpu as pltpu

_TARGET_TILE_BYTES = 4 * 1024 * 1024   # logits bytes per spatial tile (per grid step)
_SUB = 8                               # f32 sublanes per vreg
_LANE = 128                            # lanes per vreg


def _cdiv(a, b):
    return -(-a // b)


def _round_up(a, b):
    return _cdiv(a, b) * b


def _wce_stats_kernel(x_ref, t_ref, out_ref, *, num_classes, ignore_index):
    """Accumulate per-class (S_c, A_c, N_c) partials for one spatial tile."""
    C = num_classes

    # Zero the resident accumulator block at the first spatial tile of this (n, chunk).
    @pl.when(pl.program_id(2) == 0)
    def _():
        out_ref[...] = jnp.zeros_like(out_ref)

    x = x_ref[0].astype(jnp.float32)          # (C, K, 128) logits
    t = t_ref[0, 0].astype(jnp.int32)         # (K, 128)    targets
    K = x.shape[1]

    # Numerically stable softmax / logsumexp over the class axis.  Class is an outer
    # dim, so these reductions are C-1 plain vreg ops (VALU), no XLU.
    m = jnp.max(x, axis=0)                    # (K, 128)
    e = jnp.exp(x - m)                        # (C, K, 128)  EUP
    sum_e = jnp.sum(e, axis=0)                # (K, 128)
    inv = pl.reciprocal(sum_e, approx=False)  # one-row reciprocal instead of (C,K,128) divide
    p = e * inv                               # (C, K, 128)  softmax
    lse = m + jnp.log(sum_e)                  # (K, 128)     logsumexp(x) per pixel

    # One-hot(target).  Ignored and padded pixels carry out-of-range targets, so the
    # class compare is already False for them; the explicit valid-mask is only needed
    # when ignore_index is itself a real class id (static, trace-time branch).
    cls = jax.lax.broadcasted_iota(jnp.int32, (C, K, _LANE), 0)
    hit = cls == t
    if 0 <= ignore_index < C:
        hit = jnp.logical_and(hit, t != ignore_index)
    onehot = hit.astype(jnp.float32)          # (C, K, 128)

    # Register-level fold of the tile down to 8 sublanes (pure VALU adds: K is a
    # multiple of 8 so the reshape never crosses an (8,128) tile boundary), then one
    # small update of the resident accumulator block.
    def fold(v):                              # (C, K, 128) -> (C, 8, 128)
        return jnp.sum(v.reshape(C, K // _SUB, _SUB, _LANE), axis=1)

    out_ref[0, 0 * C:1 * C] += fold(p)                    # S_c partials
    out_ref[0, 1 * C:2 * C] += fold(onehot * (lse - x))   # A_c partials (-log_softmax at t)
    out_ref[0, 2 * C:3 * C] += fold(onehot)               # N_c partials (valid counts)


def weighted_cross_entropy_loss(logits, target, ignore_index=-1):
    """JAX/Pallas equivalent of WeightedCrossEntropyLoss.forward.

    logits: (N, C, *spatial) float;  target: (N, *spatial) integer class indices
    (ignore_index marks ignored pixels).  Returns a scalar float32 loss.
    """
    N, C = int(logits.shape[0]), int(logits.shape[1])
    spatial = tuple(int(d) for d in logits.shape[2:])
    assert target.shape == (N,) + spatial, "target must be (N, *spatial)"
    ignore_index = int(ignore_index)

    S = 1
    for d in spatial:
        S *= d
    itemsize = jnp.dtype(logits.dtype).itemsize

    # ---- spatial tiling: fuse spatial dims, 128 lanes per sublane-row, tiles of k_tile
    # rows.  k_tile is a multiple of 32 so int8 target blocks stay native-tile aligned
    # and the in-kernel fold to 8 sublanes is exact.
    k_needed = _cdiv(S, _LANE)
    k_cap = max(32, (_TARGET_TILE_BYTES // (C * _LANE * itemsize)) // 32 * 32)
    k_tile = min(k_cap, _round_up(k_needed, 32))
    k_total = _round_up(k_needed, k_tile)
    s_pad = k_total * _LANE

    n_tiles = k_total // k_tile
    n_outer = 2 if (n_tiles >= 2 and n_tiles % 2 == 0) else 1   # feeds both v7x cores
    n_inner = n_tiles // n_outer
    grid = (N, n_outer, n_inner)

    # Small target dtype: cuts the target HBM stream (int32 is 25% of f32 logit bytes at C=4).
    t_dtype = jnp.int8 if (C <= 127 and -128 <= ignore_index <= 127) else jnp.int32

    x3 = logits.reshape(N, C, S)
    t3 = target.reshape(N, S).astype(t_dtype)
    if s_pad > S:
        # Zero logits => exactly uniform softmax (1/C) on padded pixels, subtracted in the
        # combine below.  Padded targets get ignore_index => never hit the one-hot.
        x3 = jnp.pad(x3, ((0, 0), (0, 0), (0, s_pad - S)))
        t3 = jnp.pad(t3, ((0, 0), (0, s_pad - S)), constant_values=ignore_index)
    x4 = x3.reshape(N, C, k_total, _LANE)
    t4 = t3.reshape(N, 1, k_total, _LANE)

    out_shape = jax.ShapeDtypeStruct((N * n_outer, 3 * C, _SUB, _LANE), jnp.float32)
    out_bytes = N * n_outer * 3 * C * _SUB * _LANE * 4

    cost = pl.CostEstimate(
        flops=int(12 * N * C * s_pad),
        transcendentals=int(N * C * s_pad + 2 * N * s_pad),
        bytes_accessed=int(x4.size * itemsize
                           + t4.size * jnp.dtype(t_dtype).itemsize
                           + out_bytes),
    )

    tile_bytes = C * k_tile * _LANE * itemsize
    vmem_limit = max(32 * 1024 * 1024, 3 * tile_bytes)

    stats = pl.pallas_call(
        functools.partial(_wce_stats_kernel, num_classes=C, ignore_index=ignore_index),
        out_shape=out_shape,
        grid_spec=pltpu.PrefetchScalarGridSpec(
            num_scalar_prefetch=0,
            grid=grid,
            in_specs=[
                pl.BlockSpec((1, C, k_tile, _LANE),
                             lambda n, o, s: (n, 0, o * n_inner + s, 0)),   # logits tile
                pl.BlockSpec((1, 1, k_tile, _LANE),
                             lambda n, o, s: (n, 0, o * n_inner + s, 0)),   # target tile
            ],
            out_specs=pl.BlockSpec((1, 3 * C, _SUB, _LANE),
                                   lambda n, o, s: (n * n_outer + o, 0, 0, 0)),
        ),
        compiler_params=pltpu.CompilerParams(
            # batch and spatial-chunk axes carry independent partial outputs -> parallel;
            # the inner spatial-tile axis carries the resident accumulator -> arbitrary.
            dimension_semantics=("parallel", "parallel", "arbitrary"),
            vmem_limit_bytes=int(vmem_limit),
        ),
        cost_estimate=cost,
    )(x4, t4)

    # Tiny O(C) combine in plain JAX.
    summed = jnp.sum(stats, axis=(0, 2, 3))                         # (3*C,)
    pad_px = jnp.float32(N * (s_pad - S))
    s_c = summed[0:C] - pad_px / jnp.float32(C)                     # sum_pixels softmax_c
    a_c = summed[C:2 * C]                                           # NLL sum at target, per class
    n_c = summed[2 * C:3 * C]                                       # valid-pixel count per class
    total = jnp.float32(N * S)
    w = (total - s_c) / s_c                                         # class weights
    return jnp.sum(w * a_c) / jnp.sum(w * n_c)                      # weighted-mean cross entropy


def _reference_wce(logits, target, ignore_index=-1):
    """Pure-JAX reference of the PyTorch forward."""
    C = logits.shape[1]
    p = jax.nn.softmax(logits, axis=1)
    flat = jnp.moveaxis(p, 1, 0).reshape(C, -1)
    w = jnp.sum(1.0 - flat, axis=-1) / jnp.sum(flat, axis=-1)
    logp = jax.nn.log_softmax(logits, axis=1)
    valid = target != ignore_index
    t_safe = jnp.where(valid, target, 0)
    lp_t = jnp.take_along_axis(logp, t_safe[:, None], axis=1)[:, 0]
    w_t = w[t_safe] * valid.astype(jnp.float32)
    return jnp.sum(-lp_t * w_t) / jnp.sum(w_t)


if __name__ == "__main__":
    key = jax.random.PRNGKey(0)
    k1, k2, k3 = jax.random.split(key, 3)

    N, C, H, W = 2, 4, 16, 16
    logits = jax.random.normal(k1, (N, C, H, W), dtype=jnp.float32)
    target = jax.random.randint(k2, (N, H, W), 0, C, dtype=jnp.int32)
    # A few ignored pixels to exercise ignore_index=-1.
    target = jnp.where(jax.random.uniform(k3, (N, H, W)) < 0.1, -1, target)

    loss = weighted_cross_entropy_loss(logits, target, ignore_index=-1)
    loss = jax.block_until_ready(loss)

    ref = _reference_wce(logits, target, ignore_index=-1)
    assert jnp.allclose(loss, ref, rtol=1e-4, atol=1e-6), (loss, ref)

    print("KERNEL_OK")
</pallas_src>

<mosaic_0001>
module attributes {stable_mosaic.version = 11 : i64} {
  func.func @_wce_stats_kernel(%arg0: i32, %arg1: i32, %arg2: i32, %arg3: memref<1x4x32x128xf32, #tpu.memory_space<vmem>>, %arg4: memref<1x1x32x128xi8, #tpu.memory_space<vmem>>, %arg5: memref<1x12x8x128xf32, #tpu.memory_space<vmem>>) attributes {dimension_semantics = [#tpu.dimension_semantics<parallel>, #tpu.dimension_semantics<parallel>, #tpu.dimension_semantics<arbitrary>], iteration_bounds = array<i64: 2, 1, 1>, scalar_prefetch = 0 : i64, scratch_operands = 0 : i64, tpu.core_type = #tpu.core_type<tc>, window_params = [{transform_indices = @transform_0, window_bounds = array<i64: 1, 4, 32, 128>}, {transform_indices = @transform_1, window_bounds = array<i64: 1, 1, 32, 128>}, {transform_indices = @transform_2, window_bounds = array<i64: 1, 12, 8, 128>}]} {
    %c0_i32 = arith.constant 0 : i32
    %0 = arith.cmpi eq, %arg2, %c0_i32 : i32
    %1 = arith.extui %0 : i1 to i32
    %c0_i32_0 = arith.constant 0 : i32
    %2 = arith.cmpi ne, %1, %c0_i32_0 : i32
    scf.if %2 {
      %cst_34 = arith.constant 0.000000e+00 : f32
      %54 = vector.broadcast %cst_34 : f32 to vector<1x12x8x128xf32>
      %c0_35 = arith.constant 0 : index
      %c0_36 = arith.constant 0 : index
      %c0_37 = arith.constant 0 : index
      %c0_38 = arith.constant 0 : index
      %55 = vector.load %arg5[%c0_35, %c0_36, %c0_37, %c0_38] : memref<1x12x8x128xf32, #tpu.memory_space<vmem>>, vector<1x12x8x128xf32>
      tpu.vector_store %arg5[%c0_35, %c0_36, %c0_37, %c0_38], %54 {strides = array<i32>} : memref<1x12x8x128xf32, #tpu.memory_space<vmem>>, vector<1x12x8x128xf32>,
    } else {
    }
    %c0 = arith.constant 0 : index
    %c0_1 = arith.constant 0 : index
    %c0_2 = arith.constant 0 : index
    %c0_3 = arith.constant 0 : index
    %3 = vector.load %arg3[%c0, %c0_1, %c0_2, %c0_3] : memref<1x4x32x128xf32, #tpu.memory_space<vmem>>, vector<1x4x32x128xf32>
    %4 = vector.shape_cast %3 : vector<1x4x32x128xf32> to vector<4x32x128xf32>
    %c0_4 = arith.constant 0 : index
    %c0_5 = arith.constant 0 : index
    %c0_6 = arith.constant 0 : index
    %c0_7 = arith.constant 0 : index
    %5 = vector.load %arg4[%c0_4, %c0_5, %c0_6, %c0_7] : memref<1x1x32x128xi8, #tpu.memory_space<vmem>>, vector<1x1x32x128xi8>
    %6 = vector.shape_cast %5 : vector<1x1x32x128xi8> to vector<32x128xi8>
    %7 = arith.extsi %6 : vector<32x128xi8> to vector<32x128xi32>
    %cst = arith.constant dense<0xFF800000> : vector<32x128xf32>
    %8 = vector.multi_reduction <maximumf>, %4, %cst [0] : vector<4x32x128xf32> to vector<32x128xf32>
    %9 = vector.shape_cast %8 : vector<32x128xf32> to vector<1x32x128xf32>
    %10 = vector.broadcast %9 : vector<1x32x128xf32> to vector<4x32x128xf32>
    %11 = arith.subf %4, %10 : vector<4x32x128xf32>
    %12 = math.exp %11 : vector<4x32x128xf32>
    %cst_8 = arith.constant dense<0.000000e+00> : vector<32x128xf32>
    %13 = vector.multi_reduction <add>, %12, %cst_8 [0] : vector<4x32x128xf32> to vector<32x128xf32>
    %14 = tpu.reciprocal %13 : vector<32x128xf32> -> vector<32x128xf32>
    %15 = vector.shape_cast %14 : vector<32x128xf32> to vector<1x32x128xf32>
    %16 = vector.broadcast %15 : vector<1x32x128xf32> to vector<4x32x128xf32>
    %17 = arith.mulf %12, %16 : vector<4x32x128xf32>
    %18 = math.log %13 : vector<32x128xf32>
    %19 = arith.addf %8, %18 : vector<32x128xf32>
    %20 = tpu.iota {dimensions = array<i32: 0>} : vector<4x32x128xi32>
    %21 = vector.shape_cast %7 : vector<32x128xi32> to vector<1x32x128xi32>
    %22 = vector.broadcast %21 : vector<1x32x128xi32> to vector<4x32x128xi32>
    %23 = arith.cmpi eq, %20, %22 : vector<4x32x128xi32>
    %24 = arith.extui %23 : vector<4x32x128xi1> to vector<4x32x128xi32>
    %25 = arith.sitofp %24 : vector<4x32x128xi32> to vector<4x32x128xf32>
    %c0_9 = arith.constant 0 : index
    %c0_10 = arith.constant 0 : index
    %c0_11 = arith.constant 0 : index
    %c0_12 = arith.constant 0 : index
    %26 = vector.load %arg5[%c0_9, %c0_10, %c0_11, %c0_12] : memref<1x12x8x128xf32, #tpu.memory_space<vmem>>, vector<1x4x8x128xf32>
    %27 = vector.shape_cast %26 : vector<1x4x8x128xf32> to vector<4x8x128xf32>
    %28 = vector.shape_cast %17 : vector<4x32x128xf32> to vector<4x4x8x128xf32>
    %cst_13 = arith.constant dense<0.000000e+00> : vector<4x8x128xf32>
    %29 = vector.multi_reduction <add>, %28, %cst_13 [1] : vector<4x4x8x128xf32> to vector<4x8x128xf32>
    %30 = arith.addf %27, %29 : vector<4x8x128xf32>
    %c0_14 = arith.constant 0 : index
    %c0_15 = arith.constant 0 : index
    %c0_16 = arith.constant 0 : index
    %c0_17 = arith.constant 0 : index
    %31 = vector.load %arg5[%c0_14, %c0_15, %c0_16, %c0_17] : memref<1x12x8x128xf32, #tpu.memory_space<vmem>>, vector<1x4x8x128xf32>
    %32 = vector.shape_cast %31 : vector<1x4x8x128xf32> to vector<4x8x128xf32>
    %33 = vector.shape_cast %30 : vector<4x8x128xf32> to vector<1x4x8x128xf32>
    tpu.vector_store %arg5[%c0_14, %c0_15, %c0_16, %c0_17], %33 {strides = array<i32>} : memref<1x12x8x128xf32, #tpu.memory_space<vmem>>, vector<1x4x8x128xf32>,
    %c0_18 = arith.constant 0 : index
    %c4 = arith.constant 4 : index
    %c0_19 = arith.constant 0 : index
    %c0_20 = arith.constant 0 : index
    %34 = vector.load %arg5[%c0_18, %c4, %c0_19, %c0_20] : memref<1x12x8x128xf32, #tpu.memory_space<vmem>>, vector<1x4x8x128xf32>
    %35 = vector.shape_cast %34 : vector<1x4x8x128xf32> to vector<4x8x128xf32>
    %36 = vector.shape_cast %19 : vector<32x128xf32> to vector<1x32x128xf32>
    %37 = vector.broadcast %36 : vector<1x32x128xf32> to vector<4x32x128xf32>
    %38 = arith.subf %37, %4 : vector<4x32x128xf32>
    %39 = arith.mulf %25, %38 : vector<4x32x128xf32>
    %40 = vector.shape_cast %39 : vector<4x32x128xf32> to vector<4x4x8x128xf32>
    %cst_21 = arith.constant dense<0.000000e+00> : vector<4x8x128xf32>
    %41 = vector.multi_reduction <add>, %40, %cst_21 [1] : vector<4x4x8x128xf32> to vector<4x8x128xf32>
    %42 = arith.addf %35, %41 : vector<4x8x128xf32>
    %c0_22 = arith.constant 0 : index
    %c4_23 = arith.constant 4 : index
    %c0_24 = arith.constant 0 : index
    %c0_25 = arith.constant 0 : index
    %43 = vector.load %arg5[%c0_22, %c4_23, %c0_24, %c0_25] : memref<1x12x8x128xf32, #tpu.memory_space<vmem>>, vector<1x4x8x128xf32>
    %44 = vector.shape_cast %43 : vector<1x4x8x128xf32> to vector<4x8x128xf32>
    %45 = vector.shape_cast %42 : vector<4x8x128xf32> to vector<1x4x8x128xf32>
    tpu.vector_store %arg5[%c0_22, %c4_23, %c0_24, %c0_25], %45 {strides = array<i32>} : memref<1x12x8x128xf32, #tpu.memory_space<vmem>>, vector<1x4x8x128xf32>,
    %c0_26 = arith.constant 0 : index
    %c8 = arith.constant 8 : index
    %c0_27 = arith.constant 0 : index
    %c0_28 = arith.constant 0 : index
    %46 = vector.load %arg5[%c0_26, %c8, %c0_27, %c0_28] : memref<1x12x8x128xf32, #tpu.memory_space<vmem>>, vector<1x4x8x128xf32>
    %47 = vector.shape_cast %46 : vector<1x4x8x128xf32> to vector<4x8x128xf32>
    %48 = vector.shape_cast %25 : vector<4x32x128xf32> to vector<4x4x8x128xf32>
    %cst_29 = arith.constant dense<0.000000e+00> : vector<4x8x128xf32>
    %49 = vector.multi_reduction <add>, %48, %cst_29 [1] : vector<4x4x8x128xf32> to vector<4x8x128xf32>
    %50 = arith.addf %47, %49 : vector<4x8x128xf32>
    %c0_30 = arith.constant 0 : index
    %c8_31 = arith.constant 8 : index
    %c0_32 = arith.constant 0 : index
    %c0_33 = arith.constant 0 : index
    %51 = vector.load %arg5[%c0_30, %c8_31, %c0_32, %c0_33] : memref<1x12x8x128xf32, #tpu.memory_space<vmem>>, vector<1x4x8x128xf32>
    %52 = vector.shape_cast %51 : vector<1x4x8x128xf32> to vector<4x8x128xf32>
    %53 = vector.shape_cast %50 : vector<4x8x128xf32> to vector<1x4x8x128xf32>
    tpu.vector_store %arg5[%c0_30, %c8_31, %c0_32, %c0_33], %53 {strides = array<i32>} : memref<1x12x8x128xf32, #tpu.memory_space<vmem>>, vector<1x4x8x128xf32>,
    return
  }
  func.func @transform_0(%arg0: i32, %arg1: i32, %arg2: i32) -> (i32, i32, i32, i32) {
    %c1_i32 = arith.constant 1 : i32
    %0 = arith.muli %arg1, %c1_i32 : i32
    %1 = arith.addi %0, %arg2 : i32
    %c0_i32 = arith.constant 0 : i32
    %c0_i32_0 = arith.constant 0 : i32
    %c0_i32_1 = arith.constant 0 : i32
    return %arg0, %c0_i32, %1, %c0_i32_0 : i32, i32, i32, i32
  }
  func.func @transform_1(%arg0: i32, %arg1: i32, %arg2: i32) -> (i32, i32, i32, i32) {
    %c1_i32 = arith.constant 1 : i32
    %0 = arith.muli %arg1, %c1_i32 : i32
    %1 = arith.addi %0, %arg2 : i32
    %c0_i32 = arith.constant 0 : i32
    %c0_i32_0 = arith.constant 0 : i32
    %c0_i32_1 = arith.constant 0 : i32
    return %arg0, %c0_i32, %1, %c0_i32_0 : i32, i32, i32, i32
  }
  func.func @transform_2(%arg0: i32, %arg1: i32, %arg2: i32) -> (i32, i32, i32, i32) {
    %c1_i32 = arith.constant 1 : i32
    %0 = arith.muli %arg0, %c1_i32 : i32
    %1 = arith.addi %0, %arg1 : i32
    %c0_i32 = arith.constant 0 : i32
    %c0_i32_0 = arith.constant 0 : i32
    %c0_i32_1 = arith.constant 0 : i32
    %c0_i32_2 = arith.constant 0 : i32
    return %1, %c0_i32, %c0_i32_0, %c0_i32_1 : i32, i32, i32, i32
  }
}

</mosaic_0001>

<bundles_post_ra>
// kernel: tpu_custom_call.1
= control target key start
LH: loop header
LB: loop body
LE: loop exit
PB: predicated region body
PF: predicated region fallthrough
CT: control target
= control target key end

     0   :  { %7 = vsyncpa [#allocation3], 0  ;;  %s1451_s0 = inlined_call_operand.hbm [shape: f32[2,4,32,128], index: 0, kind: input, shape index: {}]   ;;  %s1452_s1 = inlined_call_operand.hbm [shape: s8[2,1,32,128], index: 1, kind: input, shape index: {}]   ;;  %s1453_s2 = inlined_call_operand.hbm [shape: f32[2,12,8,128], index: 2, kind: output, shape index: {}]  }
   0x1   :  { %9 = vsyncpa [#allocation3 + $0x1], 0 }
   0x2   :  { %10 = vsyncpa [#allocation6], 0 }
   0x3   :  { %12 = vsyncpa [#allocation6 + $0x1], 0 }
   0x4   :  { %13 = vsyncpa [#allocation4], 0 }
   0x5   :  { %15 = vsyncpa [#allocation4 + $0x1], 0  ;;  %s1002_s9 = smov 0   ;;  %s1004_s10 = smov 0  }
   0x6   :  { %s1006_s11 = smov 0   ;;  %s1008_s12 = smov 0  }
   0x7   :  { %s1010_s13 = smov 0   ;;  %s1012_s14 = smov 0  }
   0x8 LB: > { %s661_s15 = sadd.s32 4294967295, %s977_s14   ;;  %s662_s16 = sadd.s32 4294967294, %s977_s14   ;;  %s977_s14 = sphi %s1012_s14, %s21_s14   ;;  %s973_s13 = sphi %s1010_s13, %s1499_s13   ;;  %s969_s12 = sphi %s1008_s12, %s1498_s12   ;;  %s965_s11 = sphi %s1006_s11, %s1497_s11   ;;  %s961_s10 = sphi %s1004_s10, %s1496_s10   ;;  %s957_s9 = sphi %s1002_s9, %s1495_s9  }
   0x9   : > { %s40_s17 = sadd.s32 1, %s973_s13  ;;  %s51_s18 = sadd.s32 1, %s965_s11 }
   0xa   : > { %p42_p0 = scmp.ge.s32.totalorder %s40_s17, 2  ;;  %p58_p1 = scmp.ne.s32.totalorder %s965_s11, %s961_s10 }
   0xb   : > { %p59_p2 = scmp.eq.s32.totalorder %s977_s14, 0  ;;  %p64_p3 = scmp.ne.s32.totalorder %s961_s10, %s957_s9 }
   0xc   : > { %s1501_s17 = smov (%p42_p0, %s40_s17), 0  ;;  %p65_p5 = scmp.eq.s32.totalorder %s661_s15, 0 }
   0xd   : > { %p1043_p4 = por %p59_p2, %p58_p1  ;;  %s46_s20 = ssub.s32 %s973_s13, %s1501_s17 }
   0xe   : > { %p120_p6 = scmp.eq.s32.totalorder %s661_s15, 1  ;;  %p49_p7 = scmp.eq.s32.totalorder %s46_s20, 0 }
   0xf   : > { %p1049_p8 = por %p65_p5, %p64_p3  ;;  %p126_p10 = scmp.eq.s32.totalorder %s662_s16, 1 }
  0x10   : > { %p1053_p9 = por %p120_p6, %p58_p1  ;;  %p728_p13 = scmp.lt.s32.totalorder %s977_s14, 2 }
  0x11   : > { %s1466_s21 = scalar_select %p1049_p8, 1, 0 }
  0x12   : > { %s1467_s22 = scalar_select %p1053_p9, 1, 0 }
  0x13   : > { %s1058_s23 = scalar_select %p49_p7, %s965_s11, %s51_s18  }
  0x14   : > { %p1060_p11 = por %p126_p10, %p64_p3  ;;  %s1067_s25 = sand.u32 1, %s965_s11  }
  0x15   : > { %s665_s26 = sshll.u32 %s1067_s25, 7  ;;  %s708_s27 = sshll.u32 %s973_s13, 11 }
  0x16   : > { %s1468_s24 = scalar_select %p1060_p11, 1, 0 }
  0x17   : > { %s1074_s30 = scalar_lea.hbm %s1451_s0, %s708_s27  ;;  %s150_s3 = scalar_lea.vmem [#allocation2], %s665_s26 }
  0x18   : > { %s160_s4 = sshll.u32 %s150_s3, 4  ;;  %p1080_p0 = pnand %p728_p13, %p1043_p4  ;;  %s1076_s4 = int_to_ptr.vmem [resolvable:$true] %s160_s4 }
  0x19   : > { %s147_s6 = scalar_lea.sflag [#allocation3], %s1067_s25  ;;  %s831_s7 = scalar_lea.hbm %s1074_s30, 2048 }
  0x1a   : > { %p832_p2 = scmp.ne.s32.totalorder %s1074_s30, %s831_s7  ;;  %p833_p3 = pneg %p1080_p0 }
  0x1b   : > { %s836_s16 = scalar_lea.hbm %s1451_s0, 4096  ;;  %p837_p4 = scmp.lt.u32.totalorder %s1074_s30, %s1451_s0 }
  0x1c   : > { %p834_p5 = pnand %p833_p3, %p832_p2  ;;  %p838_p7 = scmp.lt.u32.totalorder %s836_s16, %s831_s7 }
  0x1d   : > { %p840_p13 = scmp.lt.u32.totalorder %s831_s7, %s1074_s30 }
  0x1e   : > { %p835_p6 = pneg %p834_p5  ;;  %p839_p10 = por %p838_p7, %p837_p4 }
  0x20   : > { %p841_p12 = por %p840_p13, %p839_p10 }
  0x22   : > { %p842_p1 = pnand %p841_p12, %p835_p6 }
  0x24   : > { %845 = shalt.err (!%p842_p1)
}
  0x25   : > { %s846_s20 = scalar_lea.vmem %s1076_s4, 2048  ;;  %s979_s26 = smov [#allocation2]  }
  0x26   : > { %p847_p2 = scmp.ne.s32.totalorder %s1076_s4, %s846_s20  ;;  %s851_s27 = sshll.u32 %s979_s26, 4  ;;  %s852_s27 = int_to_ptr.vmem [resolvable:$false] %s851_s27 }
  0x27   : > { %s853_s28 = scalar_lea.vmem %s852_s27, 4096  ;;  %p854_p9 = scmp.lt.s32.totalorder %s1076_s4, %s852_s27 }
  0x28   : > { %p849_p5 = pnand %p847_p2, %p833_p3  ;;  %p855_p4 = scmp.lt.s32.totalorder %s853_s28, %s846_s20 }
  0x2a   : > { %p850_p11 = pneg %p849_p5  ;;  %p856_p7 = por %p855_p4, %p854_p9 }
  0x2c   : > { %p857_p10 = pnand %p856_p7, %p850_p11 }
  0x2e   : > { %860 = shalt.err (!%p857_p10)
}
  0x2f   : > { %s980_s29 = smov 128   ;;  %s981_s3 = smov 8  }
  0x30   : > { %720 = dma.hbm_to_vmem [thread:$0]  (!%p1080_p0), %s1074_s30, 2048, %s1076_s4, %s147_s6, %s980_s29, %s980_s29, %s981_s3  }
  0x31   : > { %p188_p12 = scmp.lt.s32.totalorder %s977_s14, 3  ;;  %s668_s7 = sshll.u32 %s1067_s25, 3 }
  0x32   : > { %s669_s8 = sshll.u32 %s973_s13, 7  ;;  %p1470_p9 = scmp.ge.s32.totalorder %s977_s14, 1 }
  0x33   : > { %s1125_s19 = scalar_lea.hbm %s1452_s1, %s669_s8  ;;  %s174_s20 = scalar_lea.vmem [#allocation5], %s668_s7 }
  0x34   : > { %p1118_p11 = pnand %p1470_p9, %p188_p12  ;;  %s183_s26 = sshll.u32 %s174_s20, 4  ;;  %s184_s26 = int_to_ptr.vmem [resolvable:$true] %s183_s26 }
  0x35   : > { %s171_s30 = scalar_lea.sflag [#allocation6], %s1067_s25  ;;  %s861_s4 = scalar_lea.hbm %s1125_s19, 128 }
  0x36   : > { %s1471_s15 = scalar_select %p1118_p11, 1, 0 }
  0x37   : > { %p862_p1 = scmp.ne.s32.totalorder %s1125_s19, %s861_s4  ;;  %s866_s28 = scalar_lea.hbm %s1452_s1, 256 }
  0x38   : > { %p867_p2 = scmp.lt.u32.totalorder %s1125_s19, %s1452_s1  ;;  %p868_p5 = scmp.lt.u32.totalorder %s866_s28, %s861_s4 }
  0x39   : > { %p864_p6 = pnand %p862_p1, %p833_p3  ;;  %p870_p7 = scmp.lt.u32.totalorder %s861_s4, %s1125_s19 }
  0x3a   : > { %p869_p4 = por %p868_p5, %p867_p2 }
  0x3b   : > { %p865_p13 = pneg %p864_p6 }
  0x3c   : > { %p871_p10 = por %p870_p7, %p869_p4 }
  0x3e   : > { %p872_p12 = pnand %p871_p10, %p865_p13 }
  0x40   : > { %875 = shalt.err (!%p872_p12)
}
  0x41   : > { %s876_s25 = scalar_lea.vmem %s184_s26, 128  ;;  %s982_s7 = smov [#allocation5]  }
  0x42   : > { %p877_p9 = scmp.ne.s32.totalorder %s184_s26, %s876_s25  ;;  %s881_s8 = sshll.u32 %s982_s7, 4  ;;  %s882_s8 = int_to_ptr.vmem [resolvable:$false] %s881_s8 }
  0x43   : > { %s883_s16 = scalar_lea.vmem %s882_s8, 256  ;;  %p884_p8 = scmp.lt.s32.totalorder %s184_s26, %s882_s8 }
  0x44   : > { %p879_p1 = pnand %p877_p9, %p833_p3  ;;  %p885_p11 = scmp.lt.s32.totalorder %s883_s16, %s876_s25 }
  0x46   : > { %p880_p6 = pneg %p879_p1  ;;  %p886_p2 = por %p885_p11, %p884_p8 }
  0x48   : > { %p887_p5 = pnand %p886_p2, %p880_p6 }
  0x4a   : > { %890 = shalt.err (!%p887_p5)
}
  0x4b   : > { %723 = dma.hbm_to_vmem [thread:$0]  (!%p1080_p0), %s1125_s19, 128, %s184_s26, %s171_s30  }
  0x4c   : > { %p1472_p13 = scmp.ne.s32.totalorder %s1471_s15, 0 }
  0x4e   : > { %192 = sbr.rel (%p1472_p13) target bundleno = 182 (0xb6), region = 28 }
  0x55   : > { %s1150_s18 = sand.u32 1, %s961_s10   ;;  %p1473_p3 = scmp.ne.s32.totalorder %s1466_s21, 0 }
  0x56   : > { %s671_s20 = sshll.u32 %s1150_s18, 7  ;;  %s195_s4 = scalar_lea.sflag [#allocation3], %s1150_s18 }
  0x57   : > { %s198_s6 = scalar_lea.vmem [#allocation2], %s671_s20 }
  0x58   : > { %944 = dma.done.wait (%p1473_p3), %s195_s4, 2048  }
  0x59   : > { %946 = vsyncadd (%p1473_p3), %s195_s4, 4294965248  ;;  %s672_s5 = sshll.u32 %s1150_s18, 3  ;;  %s204_s15 = scalar_lea.sflag [#allocation6], %s1150_s18 }
  0x5a   : > { %s207_s19 = scalar_lea.vmem [#allocation5], %s672_s5 }
  0x5b   : > { %948 = dma.done.wait (%p1473_p3), %s204_s15, 128  }
  0x5c   : > { %950 = vsyncadd (%p1473_p3), %s204_s15, 4294967168  ;;  %v1164_v0 = vld [vmem:[%s198_s6] sm:$0xff]  ;;  %v1166_v1 = vld [vmem:[%s198_s6 + $0x8] sm:$0xff]  ;;  %s709_s21 = smul.u32 96, %s1150_s18  ;;  %s533_s25 = scalar_lea.sflag [#allocation4], %s1150_s18 }
  0x5d   : > { %v1168_v2 = vld [vmem:[%s198_s6 + $0x10] sm:$0xff]  ;;  %v1170_v3 = vld [vmem:[%s198_s6 + $0x18] sm:$0xff]  ;;  %v1172_v4 = vld [vmem:[%s198_s6 + $0x20] sm:$0xff]  ;;  %s710_s30 = smul.u32 1536, %s969_s12  ;;  %p1492_p0 = scmp.ne.s32.totalorder %s1467_s22, 0 }
  0x5e   : > { %v1174_v5 = vld [vmem:[%s198_s6 + $0x28] sm:$0xff]  ;;  %v1176_v6 = vld [vmem:[%s198_s6 + $0x30] sm:$0xff]  ;;  %v1178_v7 = vld [vmem:[%s198_s6 + $0x38] sm:$0xff]  ;;  %v274_v9 = vmax.f32 %v1164_v0, %v1172_v4  ;;  %s1341_s26 = scalar_lea.vmem [#allocation7], %s709_s21  ;;  %s984_s12 = smov [#allocation7]  }
  0x5f   : > { %v1180_v8 = vld [vmem:[%s198_s6 + $0x40] sm:$0xff]  ;;  %v277_v10 = vmax.f32 %v1166_v1, %v1174_v5  ;;  %v1186_v11 = vld [vmem:[%s198_s6 + $0x48] sm:$0xff]  ;;  %v1188_v12 = vld [vmem:[%s198_s6 + $0x50] sm:$0xff]  ;;  %v280_v14 = vmax.f32 %v1168_v2, %v1176_v6  ;;  %v283_v15 = vmax.f32 %v1170_v3, %v1178_v7  ;;  %s547_s27 = sshll.u32 %s1341_s26, 4  ;;  %s1399_s3 = scalar_lea.hbm %s1453_s2, %s710_s30  ;;  %s1401_s27 = int_to_ptr.vmem [resolvable:$true] %s547_s27 }
  0x60   : > { %v1190_v13 = vld [vmem:[%s198_s6 + $0x58] sm:$0xff]  ;;  %v1196_v16 = vld [vmem:[%s198_s6 + $0x60] sm:$0xff]  ;;  %v1198_v17 = vld [vmem:[%s198_s6 + $0x68] sm:$0xff]  ;;  %v275_v19 = vmax.f32 %v274_v9, %v1180_v8  ;;  %s891_s7 = scalar_lea.vmem %s1401_s27, 1536  ;;  %s895_s8 = sshll.u32 %s984_s12, 4  ;;  %s896_s8 = int_to_ptr.vmem [resolvable:$false] %s895_s8 }
  0x61   : > { %1474 = vst [vmem:[#allocation11_spill] sm:$0xff] %v1198_v17  ;;  %v1200_v18 = vld [vmem:[%s198_s6 + $0x70] sm:$0xff]  ;;  %v278_v20 = vmax.f32 %v277_v10, %v1186_v11  ;;  %v1204_v21 = vld [vmem:[%s198_s6 + $0x78] sm:$0xff]  ;;  %v281_v22 = vmax.f32 %v280_v14, %v1188_v12  ;;  %v284_v23 = vmax.f32 %v283_v15, %v1190_v13  ;;  %v269_v24 = vld [vmem:[%s207_s19] sm:$0xff]  ;;  %v983_v10 = vmov 0.0   ;;  %p892_p8 = scmp.ne.s32.totalorder %s1401_s27, %s891_s7  ;;  %s897_s16 = scalar_lea.vmem %s896_s8, 3072 }
  0x62   : > { %1475 = vst [vmem:[#allocation12_spill] sm:$0xff] %v1200_v18  ;;  %1476 = vst [vmem:[#allocation13_spill] sm:$0xff] %v1204_v21  ;;  %v1209_v25 = vmax.f32 %v275_v19, %v1196_v16  ;;  %v1224_v31 = vunpack.c.0.s8 %v269_v24  ;;  %v1230_v34 = vunpack.c.1.s8 %v269_v24  ;;  %v1232_v35 = vunpack.c.2.s8 %v269_v24  ;;  %p898_p7 = scmp.lt.s32.totalorder %s1401_s27, %s896_s8  ;;  %p899_p10 = scmp.lt.s32.totalorder %s897_s16, %s891_s7 }
  0x63   : > { %v1212_v26 = vmax.f32 %v278_v20, %v1198_v17  ;;  %v1215_v27 = vmax.f32 %v281_v22, %v1200_v18  ;;  %v1218_v28 = vmax.f32 %v284_v23, %v1204_v21  ;;  %v1240_v39 = vunpack.c.3.s8 %v269_v24  ;;  %p893_p11 = pnand %p892_p8, %p1492_p0 }
  0x64   : > { %v286_v29 = vsub.f32 %v1164_v0, %v1209_v25  ;;  %v290_v36 = vsub.f32 %v1172_v4, %v1209_v25  ;;  %v294_v41 = vsub.f32 %v1180_v8, %v1209_v25  ;;  %v298_v48 = vsub.f32 %v1196_v16, %v1209_v25  ;;  %p900_p12 = por %p899_p10, %p898_p7 }
  0x65   : > { %v287_v30 = vsub.f32 %v1166_v1, %v1212_v26  ;;  %v288_v32 = vsub.f32 %v1168_v2, %v1215_v27  ;;  %v289_v33 = vsub.f32 %v1170_v3, %v1218_v28  ;;  %v291_v37 = vsub.f32 %v1174_v5, %v1212_v26  ;;  %p894_p4 = pneg %p893_p11 }
  0x66   : > { %v292_v38 = vsub.f32 %v1176_v6, %v1215_v27  ;;  %v293_v40 = vsub.f32 %v1178_v7, %v1218_v28  ;;  %v295_v42 = vsub.f32 %v1186_v11, %v1212_v26  ;;  %v296_v43 = vsub.f32 %v1188_v12, %v1215_v27 }
  0x67   : > { %v297_v44 = vsub.f32 %v1190_v13, %v1218_v28  ;;  %v302_v45 = vmul.f32 1.442695, %v286_v29  ;;  %v304_v46 = vmul.f32 1.442695, %v287_v30  ;;  %v306_v47 = vmul.f32 1.442695, %v288_v32  ;;  %p901_p9 = pnand %p900_p12, %p894_p4 }
  0x68   : > { %v299_v49 = vsub.f32 %v1198_v17, %v1212_v26  ;;  %v300_v50 = vsub.f32 %v1200_v18, %v1215_v27  ;;  %v308_v51 = vmul.f32 1.442695, %v289_v33  ;;  %v301_v52 = vsub.f32 %v1204_v21, %v1218_v28 }
  0x69   : > { %783 = vpow2.f32 %v302_v45  ;;  %v310_v53 = vmul.f32 1.442695, %v290_v36  ;;  %v312_v54 = vmul.f32 1.442695, %v291_v37  ;;  %v314_v55 = vmul.f32 1.442695, %v292_v38 }
  0x6a   : > { %785 = vpow2.f32 %v304_v46  ;;  %v316_v56 = vmul.f32 1.442695, %v293_v40  ;;  %v318_v57 = vmul.f32 1.442695, %v294_v41  ;;  %v320_v58 = vmul.f32 1.442695, %v295_v42 }
  0x6b   : > { %787 = vpow2.f32 %v306_v47  ;;  %v322_v59 = vmul.f32 1.442695, %v296_v43  ;;  %v324_v60 = vmul.f32 1.442695, %v297_v44  ;;  %v326_v61 = vmul.f32 1.442695, %v298_v48 }
  0x6c   : > { %789 = vpow2.f32 %v308_v51  ;;  %vm378_vm0 = vcmp.eq.s32.totalorder %v1224_v31, 0  ;;  %vm379_vm1 = vcmp.eq.s32.totalorder %v1230_v34, 0  ;;  %v328_v62 = vmul.f32 1.442695, %v299_v49 }
  0x6d   : > { %791 = vpow2.f32 %v310_v53  ;;  %v330_v63 = vmul.f32 1.442695, %v300_v50  ;;  %vm380_vm2 = vcmp.eq.s32.totalorder %v1232_v35, 0  ;;  %v332_v9 = vmul.f32 1.442695, %v301_v52 }
  0x6e   : > { %793 = vpow2.f32 %v312_v54  ;;  %vm381_vm3 = vcmp.eq.s32.totalorder %v1240_v39, 0  ;;  %v1264_v14 = vsel %vm378_vm0, 1.0, %v983_v10  ;;  %v1266_v15 = vsel %vm379_vm1, 1.0, %v983_v10 }
  0x6f   : > { %795 = vpow2.f32 %v314_v55  ;;  %vm382_vm4 = vcmp.eq.s32.totalorder %v1224_v31, 1  ;;  %vm383_vm5 = vcmp.eq.s32.totalorder %v1230_v34, 1  ;;  %v1270_v19 = vsel %vm380_vm2, 1.0, %v983_v10 }
  0x70   : > { %797 = vpow2.f32 %v316_v56  ;;  %vm384_vm6 = vcmp.eq.s32.totalorder %v1232_v35, 1  ;;  %vm385_vm7 = vcmp.eq.s32.totalorder %v1240_v39, 1  ;;  %v1274_v20 = vsel %vm381_vm3, 1.0, %v983_v10 }
  0x71   : > { %799 = vpow2.f32 %v318_v57  ;;  %v1276_v22 = vsel %vm382_vm4, 1.0, %v983_v10  ;;  %vm386_vm8 = vcmp.eq.s32.totalorder %v1224_v31, 2  ;;  %v1279_v23 = vsel %vm383_vm5, 1.0, %v983_v10 }
  0x72   : > { %801 = vpow2.f32 %v320_v58  ;;  %vm387_vm9 = vcmp.eq.s32.totalorder %v1230_v34, 2  ;;  %vm388_vm10 = vcmp.eq.s32.totalorder %v1232_v35, 2  ;;  %v1285_v29 = vsel %vm384_vm6, 1.0, %v983_v10 }
  0x73   : > { %v1283_v24 = vpop.eup %783  ;;  %803 = vpow2.f32 %v322_v59  ;;  %v1287_v30 = vsel %vm385_vm7, 1.0, %v983_v10  ;;  %vm389_vm11 = vcmp.eq.s32.totalorder %v1240_v39, 2  ;;  %v1292_v33 = vsel %vm386_vm8, 1.0, %v983_v10 }
  0x74   : > { %v1290_v32 = vpop.eup %785  ;;  %805 = vpow2.f32 %v324_v60  ;;  %vm390_vm12 = vcmp.eq.s32.totalorder %v1224_v31, 3  ;;  %vm391_vm13 = vcmp.eq.s32.totalorder %v1230_v34, 3  ;;  %v1298_v37 = vsel %vm387_vm9, 1.0, %v983_v10 }
  0x75   : > { %v1296_v36 = vpop.eup %787  ;;  %807 = vpow2.f32 %v326_v61  ;;  %v1300_v38 = vsel %vm388_vm10, 1.0, %v983_v10  ;;  %vm392_vm14 = vcmp.eq.s32.totalorder %v1232_v35, 3  ;;  %vm393_vm15 = vcmp.eq.s32.totalorder %v1240_v39, 3 }
  0x76   : > { %1477 = vst [vmem:[#allocation14_spill] sm:$0xff] %v1300_v38  ;;  %v1303_v40 = vpop.eup %789  ;;  %809 = vpow2.f32 %v328_v62  ;;  %v1306_v41 = vsel %vm390_vm12, 1.0, %v983_v10  ;;  %v1308_v31 = vsel %vm391_vm13, 1.0, %v983_v10  ;;  %v512_v42 = vadd.f32 %v1266_v15, %v1264_v14 }
  0x77   : > { %1478 = vst [vmem:[#allocation15_spill] sm:$0xff] %v1306_v41  ;;  %1479 = vst [vmem:[#allocation16_spill] sm:$0xff] %v1308_v31  ;;  %v792_v34 = vpop.eup %791  ;;  %811 = vpow2.f32 %v330_v63  ;;  %v515_v43 = vadd.f32 %v1279_v23, %v1276_v22  ;;  %v518_v35 = vadd.f32 %v1298_v37, %v1292_v33  ;;  %v1318_v46 = vsel %vm392_vm14, 1.0, %v983_v10 }
  0x78   : > { %v794_v44 = vpop.eup %793  ;;  %813 = vpow2.f32 %v332_v9  ;;  %v334_v45 = vadd.f32 %v792_v34, %v1283_v24  ;;  %1480 = vst [vmem:[#allocation17_spill] sm:$0xff] %v1318_v46  ;;  %v521_v47 = vadd.f32 %v1308_v31, %v1306_v41  ;;  %v513_v50 = vadd.f32 %v1270_v19, %v512_v42 }
  0x79   : > { %v796_v48 = vpop.eup %795  ;;  %v337_v49 = vadd.f32 %v794_v44, %v1290_v32  ;;  %v516_v51 = vadd.f32 %v1285_v29, %v515_v43  ;;  %v519_v52 = vadd.f32 %v1300_v38, %v518_v35  ;;  %v1329_v55 = vsel %vm389_vm11, 1.0, %v983_v10 }
  0x7a   : > { %v798_v53 = vpop.eup %797  ;;  %v340_v54 = vadd.f32 %v796_v48, %v1296_v36  ;;  %1481 = vst [vmem:[#allocation18_spill] sm:$0xff] %v1329_v55  ;;  %v1333_v56 = vsel %vm393_vm15, 1.0, %v983_v10  ;;  %v522_v57 = vadd.f32 %v1318_v46, %v521_v47  ;;  %v514_v60 = vadd.f32 %v1274_v20, %v513_v50 }
  0x7b   : > { %1482 = vst [vmem:[#allocation19_spill] sm:$0xff] %v1333_v56  ;;  %v800_v58 = vpop.eup %799  ;;  %v343_v59 = vadd.f32 %v798_v53, %v1303_v40  ;;  %v517_v61 = vadd.f32 %v1287_v30, %v516_v51  ;;  %v520_v62 = vadd.f32 %v1329_v55, %v519_v52 }
  0x7c   : > { %v802_v63 = vpop.eup %801  ;;  %v335_v9 = vadd.f32 %v800_v58, %v334_v45  ;;  %v523_v42 = vadd.f32 %v1333_v56, %v522_v57  ;;  %701 = vst [vmem:[%s1341_s26 + $0x40] sm:$0xff] %v514_v60 }
  0x7d   : > { %v804_v43 = vpop.eup %803  ;;  %v338_v35 = vadd.f32 %v802_v63, %v337_v49  ;;  %702 = vst [vmem:[%s1341_s26 + $0x48] sm:$0xff] %v517_v61  ;;  %703 = vst [vmem:[%s1341_s26 + $0x50] sm:$0xff] %v520_v62 }
  0x7e   : > { %v806_v39 = vpop.eup %805  ;;  %v341_v10 = vadd.f32 %v804_v43, %v340_v54  ;;  %704 = vst [vmem:[%s1341_s26 + $0x58] sm:$0xff] %v523_v42 }
  0x7f   : > { %v808_v31 = vpop.eup %807  ;;  %v344_v41 = vadd.f32 %v806_v39, %v343_v59 }
  0x80   : > { %v810_v47 = vpop.eup %809  ;;  %v336_v50 = vadd.f32 %v808_v31, %v335_v9 }
  0x81   : > { %v812_v45 = vpop.eup %811  ;;  %v339_v51 = vadd.f32 %v810_v47, %v338_v35 }
  0x82   : > { %v814_v52 = vpop.eup %813  ;;  %v342_v49 = vadd.f32 %v812_v45, %v341_v10  ;;  %815 = vrcp.f32 %v336_v50 }
  0x83   : > { %v345_v54 = vadd.f32 %v814_v52, %v344_v41  ;;  %817 = vrcp.f32 %v339_v51 }
  0x84   : > { %819 = vrcp.f32 %v342_v49 }
  0x85   : > { %821 = vrcp.f32 %v345_v54 }
  0x86   : > { %823 = vlog2.f32 %v336_v50 }
  0x87   : > { %825 = vlog2.f32 %v339_v51 }
  0x88   : > { %827 = vlog2.f32 %v342_v49 }
  0x89   : > { %829 = vlog2.f32 %v345_v54 }
  0x8c   : > { %v816_v57 = vpop.eup %815 }
  0x8d   : > { %v818_v59 = vpop.eup %817  ;;  %v350_v60 = vmul.f32 %v816_v57, %v1283_v24  ;;  %v354_v61 = vmul.f32 %v816_v57, %v792_v34  ;;  %v358_v62 = vmul.f32 %v816_v57, %v800_v58  ;;  %v362_v9 = vmul.f32 %v816_v57, %v808_v31 }
  0x8e   : > { %v820_v42 = vpop.eup %819  ;;  %v351_v35 = vmul.f32 %v818_v59, %v1290_v32  ;;  %v355_v10 = vmul.f32 %v818_v59, %v794_v44  ;;  %v359_v56 = vmul.f32 %v818_v59, %v802_v63  ;;  %v363_v41 = vmul.f32 %v818_v59, %v810_v47 }
  0x8f   : > { %v822_v46 = vpop.eup %821  ;;  %v352_v21 = vmul.f32 %v820_v42, %v1296_v36  ;;  %v356_v50 = vmul.f32 %v820_v42, %v796_v48  ;;  %v360_v51 = vmul.f32 %v820_v42, %v804_v43  ;;  %v364_v49 = vmul.f32 %v820_v42, %v812_v45 }
  0x90   : > { %v824_v54 = vpop.eup %823  ;;  %v353_v18 = vmul.f32 %v822_v46, %v1303_v40  ;;  %v430_v55 = vadd.f32 %v351_v35, %v350_v60  ;;  %v357_v24 = vmul.f32 %v822_v46, %v798_v53  ;;  %v433_v34 = vadd.f32 %v355_v10, %v354_v61 }
  0x91   : > { %v826_v58 = vpop.eup %825  ;;  %v361_v31 = vmul.f32 %v822_v46, %v806_v39  ;;  %v436_v57 = vadd.f32 %v359_v56, %v358_v62  ;;  %v365_v38 = vmul.f32 %v822_v46, %v814_v52  ;;  %v439_v32 = vadd.f32 %v363_v41, %v362_v9  ;;  %v1484_v41 = vld [vmem:[#allocation14_spill] sm:$0xff] }
  0x92   : > { %v828_v44 = vpop.eup %827  ;;  %v431_v63 = vadd.f32 %v430_v55, %v352_v21  ;;  %v434_v47 = vadd.f32 %v433_v34, %v356_v50  ;;  %v367_v59 = vmul.f32 0.6931472, %v824_v54  ;;  %v369_v17 = vmul.f32 0.6931472, %v826_v58  ;;  %v1488_v54 = vld [vmem:[#allocation15_spill] sm:$0xff]  ;;  %v1489_v34 = vld [vmem:[#allocation16_spill] sm:$0xff] }
  0x93   : > { %v830_v36 = vpop.eup %829  ;;  %v437_v48 = vadd.f32 %v436_v57, %v360_v51  ;;  %v440_v43 = vadd.f32 %v439_v32, %v364_v49  ;;  %v371_v45 = vmul.f32 0.6931472, %v828_v44  ;;  %v1486_v51 = vld [vmem:[#allocation12_spill] sm:$0xff]  ;;  %v1487_v49 = vld [vmem:[#allocation13_spill] sm:$0xff]  ;;  %v1491_v44 = vld [vmem:[#allocation19_spill] sm:$0xff] }
  0x94   : > { %v432_v40 = vadd.f32 %v431_v63, %v353_v18  ;;  %v435_v60 = vadd.f32 %v434_v47, %v357_v24  ;;  %v373_v53 = vmul.f32 0.6931472, %v830_v36  ;;  %v374_v39 = vadd.f32 %v367_v59, %v1209_v25 }
  0x95   : > { %v438_v46 = vadd.f32 %v437_v48, %v361_v31  ;;  %v441_v56 = vadd.f32 %v440_v43, %v365_v38  ;;  %v375_v21 = vadd.f32 %v369_v17, %v1212_v26  ;;  %v376_v55 = vadd.f32 %v371_v45, %v1215_v27  ;;  %v1490_v31 = vld [vmem:[#allocation17_spill] sm:$0xff] }
  0x96   : > { %v377_v52 = vadd.f32 %v373_v53, %v1218_v28  ;;  %v455_v61 = vsub.f32 %v374_v39, %v1164_v0  ;;  %446 = vst [vmem:[%s1341_s26] sm:$0xff] %v432_v40  ;;  %447 = vst [vmem:[%s1341_s26 + $0x8] sm:$0xff] %v435_v60  ;;  %v459_v38 = vsub.f32 %v374_v39, %v1172_v4 }
  0x97   : > { %v456_v62 = vsub.f32 %v375_v21, %v1166_v1  ;;  %v457_v18 = vsub.f32 %v376_v55, %v1168_v2  ;;  %v460_v17 = vsub.f32 %v375_v21, %v1174_v5  ;;  %448 = vst [vmem:[%s1341_s26 + $0x10] sm:$0xff] %v438_v46  ;;  %449 = vst [vmem:[%s1341_s26 + $0x18] sm:$0xff] %v441_v56 }
  0x98   : > { %v458_v9 = vsub.f32 %v377_v52, %v1170_v3  ;;  %v471_v25 = vmul.f32 %v1264_v14, %v455_v61  ;;  %v461_v1 = vsub.f32 %v376_v55, %v1176_v6  ;;  %v462_v2 = vsub.f32 %v377_v52, %v1178_v7 }
  0x99   : > { %v472_v26 = vmul.f32 %v1266_v15, %v456_v62  ;;  %v473_v0 = vmul.f32 %v1270_v19, %v457_v18  ;;  %v475_v3 = vmul.f32 %v1276_v22, %v459_v38  ;;  %v476_v28 = vmul.f32 %v1279_v23, %v460_v17 }
  0x9a   : > { %v474_v27 = vmul.f32 %v1274_v20, %v458_v9  ;;  %v463_v4 = vsub.f32 %v374_v39, %v1180_v8  ;;  %v477_v5 = vmul.f32 %v1285_v29, %v461_v1  ;;  %v478_v42 = vmul.f32 %v1287_v30, %v462_v2  ;;  %v1483_v8 = vld [vmem:[#allocation11_spill] sm:$0xff] }
  0x9b   : > { %v487_v14 = vadd.f32 %v472_v26, %v471_v25  ;;  %v464_v15 = vsub.f32 %v375_v21, %v1186_v11  ;;  %v490_v19 = vadd.f32 %v476_v28, %v475_v3  ;;  %v465_v6 = vsub.f32 %v376_v55, %v1188_v12  ;;  %v1485_v11 = vld [vmem:[#allocation18_spill] sm:$0xff] }
  0x9c   : > { %v466_v7 = vsub.f32 %v377_v52, %v1190_v13  ;;  %v479_v20 = vmul.f32 %v1292_v33, %v463_v4  ;;  %v467_v23 = vsub.f32 %v374_v39, %v1196_v16  ;;  %v468_v10 = vsub.f32 %v375_v21, %v1483_v8 }
  0x9d   : > { %v488_v35 = vadd.f32 %v487_v14, %v473_v0  ;;  %v480_v22 = vmul.f32 %v1298_v37, %v464_v15  ;;  %v491_v29 = vadd.f32 %v490_v19, %v477_v5  ;;  %v481_v30 = vmul.f32 %v1484_v41, %v465_v6 }
  0x9e   : > { %v482_v50 = vmul.f32 %v1485_v11, %v466_v7  ;;  %v469_v12 = vsub.f32 %v376_v55, %v1486_v51  ;;  %v470_v37 = vsub.f32 %v377_v52, %v1487_v49  ;;  %v483_v16 = vmul.f32 %v1488_v54, %v467_v23 }
  0x9f   : > { %v489_v13 = vadd.f32 %v488_v35, %v474_v27  ;;  %v493_v33 = vadd.f32 %v480_v22, %v479_v20  ;;  %v492_v24 = vadd.f32 %v491_v29, %v478_v42  ;;  %v484_v58 = vmul.f32 %v1489_v34, %v468_v10 }
  0xa0   : > { %v485_v57 = vmul.f32 %v1490_v31, %v469_v12  ;;  %v486_v63 = vmul.f32 %v1491_v44, %v470_v37 }
  0xa1   : > { %v494_v32 = vadd.f32 %v493_v33, %v481_v30  ;;  %v496_v47 = vadd.f32 %v484_v58, %v483_v16  ;;  %693 = vst [vmem:[%s1341_s26 + $0x20] sm:$0xff] %v489_v13  ;;  %694 = vst [vmem:[%s1341_s26 + $0x28] sm:$0xff] %v492_v24 }
  0xa3   : > { %v495_v59 = vadd.f32 %v494_v32, %v482_v50  ;;  %v497_v36 = vadd.f32 %v496_v47, %v485_v57 }
  0xa5   : > { %v498_v48 = vadd.f32 %v497_v36, %v486_v63  ;;  %695 = vst [vmem:[%s1341_s26 + $0x30] sm:$0xff] %v495_v59 }
  0xa7   : > { %696 = vst [vmem:[%s1341_s26 + $0x38] sm:$0xff] %v498_v48 }
  0xa8   : > { %904 = shalt.err (!%p901_p9)
}
  0xa9   : > { %s905_s20 = scalar_lea.hbm %s1399_s3, 1536  ;;  %s909_s5 = scalar_lea.hbm %s1453_s2, 3072 }
  0xaa   : > { %p906_p1 = scmp.ne.s32.totalorder %s1399_s3, %s905_s20  ;;  %p910_p5 = scmp.lt.u32.totalorder %s1399_s3, %s1453_s2 }
  0xab   : > { %p911_p13 = scmp.lt.u32.totalorder %s909_s5, %s905_s20  ;;  %p913_p8 = scmp.lt.u32.totalorder %s905_s20, %s1399_s3 }
  0xac   : > { %p907_p6 = pnand %p906_p1, %p1492_p0 }
  0xad   : > { %p912_p3 = por %p911_p13, %p910_p5 }
  0xae   : > { %p908_p2 = pneg %p907_p6 }
  0xaf   : > { %p914_p11 = por %p913_p8, %p912_p3 }
  0xb1   : > { %p915_p4 = pnand %p914_p11, %p908_p2 }
  0xb3   : > { %918 = shalt.err (!%p915_p4)
}
  0xb4   : > { %s985_s21 = smov 128   ;;  %s986_s26 = smov 8  }
  0xb5   : > { %715 = dma.vmem_to_hbm [thread:$0]  (%p1492_p0), %s1401_s27, 1536, %s1399_s3, %s533_s25, %s985_s21, %s985_s21, %s986_s26  }
  0xb6 PF: > { %s562_s30 = sand.u32 1, %s957_s9   ;;  %p1493_p7 = scmp.ne.s32.totalorder %s1468_s24, 0 }
  0xb7   : > { %p1494_p10 = scmp.ge.s32.totalorder %s977_s14, 2  ;;  %s563_s28 = scalar_lea.sflag [#allocation4], %s562_s30 }
  0xb9   : > { %p725_p12 = pnand %p1494_p10, %p1493_p7 }
  0xbb   : > { %952 = dma.done.wait (!%p725_p12), %s563_s28, 1536  }
  0xbc   : > { %954 = vsyncadd (!%p725_p12), %s563_s28, 4294965760  ;;  %s21_s14 = sadd.s32 1, %s977_s14   ;;  %s1495_s9 = smov %s961_s10 }
  0xbd   : > { %p18_p9 = scmp.ge.s32.totalorder %s21_s14, 4   ;;  %s1496_s10 = smov %s965_s11 }
  0xbe   : > { %s1497_s11 = smov %s1058_s23  ;;  %s1498_s12 = smov %s973_s13 }
  0xbf   : > { %s1499_s13 = smov %s1501_s17  ;;  %20 = sbr.rel (!%p18_p9) target bundleno = 8 (0x8), region = 92 }
  0xc6   :  { %568 = vsyncpa [#allocation3], 1 }
  0xc7   :  { %570 = vsyncpa [#allocation3 + $0x1], 1 }
  0xc8   :  { %571 = vsyncpa [#allocation6], 1 }
  0xc9   :  { %573 = vsyncpa [#allocation6 + $0x1], 1 }
  0xca   :  { %574 = vsyncpa [#allocation4], 1 }
  0xcb   :  { %576 = vsyncpa [#allocation4 + $0x1], 1 }

</bundles_post_ra>
